<compile_context>
chip_gen: v7x
topology: tpu7x:2x2x1
jax: 0.10.0
libtpu: 0.0.40
codegen_flags: <defaults>
</compile_context>

<pallas_src>
import functools

import jax
import jax.numpy as jnp
import numpy as np
from jax import lax
from jax.experimental import pallas as pl
from jax.experimental.pallas import tpu as pltpu

EPS = 1e-5
NEG_SLOPE = 0.01


# ---------------------------------------------------------------------------
# Pass 1: conv (single im2col matmul) + bias + per-tile BN partial statistics
# ---------------------------------------------------------------------------
def conv_stats_kernel(p_ref, w_ref, b_ref, conv_ref, stats_ref):
    # p_ref    : (K, TM)     im2col patch columns for this M-tile (lane-dense)
    # w_ref    : (Cout, K)   folded conv weight
    # b_ref    : (Cout, 1)   conv bias
    # conv_ref : (Cout, TM)  conv + bias output for this tile (lane-dense)
    # stats_ref: (1, Cout, 2) per-tile [sum, sum_of_squares] per channel (f32)
    conv = jnp.dot(w_ref[...], p_ref[...], preferred_element_type=jnp.float32)
    conv = conv + b_ref[...]                       # lane-broadcast of (Cout,1)
    conv_ref[...] = conv.astype(conv_ref.dtype)

    s = jnp.sum(conv, axis=1, keepdims=True)           # (Cout, 1)
    ss = jnp.sum(conv * conv, axis=1, keepdims=True)   # (Cout, 1)
    stats_ref[...] = jnp.concatenate([s, ss], axis=1)[None]   # (1, Cout, 2)


# ---------------------------------------------------------------------------
# Pass 2: y = conv * scale + shift ; LeakyReLU
# ---------------------------------------------------------------------------
def bn_act_kernel(conv_ref, scale_ref, shift_ref, out_ref):
    # conv_ref: (Cout, TM), scale/shift: (Cout, 1), out_ref: (Cout, TM)
    y = conv_ref[...] * scale_ref[...] + shift_ref[...]
    out_ref[...] = jnp.where(y >= 0, y, NEG_SLOPE * y).astype(out_ref.dtype)


def _pick_tm(M, K, cout, max_tm, vmem_budget_bytes=16 << 20):
    """Largest 128-multiple tile that divides M, capped by max_tm and a VMEM budget
    (double-buffered f32 input + output tiles). Falls back to a single full-extent
    tile if M is not 128-aligned."""
    def step_bytes(tm):
        return 2 * 4 * tm * (K + 2 * cout)   # 2x (double buffer) * f32 * (in + out rows)

    best = None
    cand = 128
    while cand <= min(M, max_tm):
        if M % cand == 0 and step_bytes(cand) <= vmem_budget_bytes:
            best = cand
        cand += 128
    return best if best is not None else M


def conv_block_forward(x_nchw, w_oihw, b, gamma, beta, padding=1,
                       max_tm=2048, matmul_dtype=jnp.float32):
    """ConvBlock forward. x_nchw: (N, Cin, H, W) f32 -> (N, Cout, H, W) f32."""
    N, Cin, H, W = x_nchw.shape
    Cout, _, KH, KW = w_oihw.shape

    # Reflect pad (NCHW, spatial dims only).
    xpad = jnp.pad(x_nchw, ((0, 0), (0, 0), (padding, padding), (padding, padding)),
                   mode="reflect")
    Hp, Wp = H + 2 * padding, W + 2 * padding
    Ho, Wo = Hp - KH + 1, Wp - KW + 1
    M = N * Ho * Wo
    K = KH * KW * Cin

    # im2col -> lane-dense (K, M); k ordered (ky, kx, ci), m ordered (n, h, w).
    cols = []
    for ky in range(KH):
        for kx in range(KW):
            sl = xpad[:, :, ky:ky + Ho, kx:kx + Wo]                 # (N, Cin, Ho, Wo)
            cols.append(jnp.transpose(sl, (1, 0, 2, 3)).reshape(Cin, M))
    patches = jnp.concatenate(cols, axis=0).astype(matmul_dtype)    # (K, M)

    # Weight OIHW -> (Cout, K) with matching k order; bias -> (Cout, 1).
    w2 = jnp.transpose(w_oihw, (0, 2, 3, 1)).reshape(Cout, K).astype(matmul_dtype)
    b2 = b.reshape(Cout, 1).astype(jnp.float32)

    tm = _pick_tm(M, K, Cout, max_tm)
    n_tiles = M // tm

    # ---- pass 1: conv + bias + partial BN stats (tiled over M, megacore-parallel) ----
    conv, part_stats = pl.pallas_call(
        conv_stats_kernel,
        out_shape=(jax.ShapeDtypeStruct((Cout, M), jnp.float32),
                   jax.ShapeDtypeStruct((n_tiles, Cout, 2), jnp.float32)),
        grid_spec=pltpu.PrefetchScalarGridSpec(
            num_scalar_prefetch=0,
            grid=(n_tiles,),
            in_specs=[pl.BlockSpec((K, tm), lambda i: (0, i)),
                      pl.BlockSpec((Cout, K), lambda i: (0, 0)),
                      pl.BlockSpec((Cout, 1), lambda i: (0, 0))],
            out_specs=[pl.BlockSpec((Cout, tm), lambda i: (0, i)),
                       pl.BlockSpec((1, Cout, 2), lambda i: (i, 0, 0))]),
        compiler_params=pltpu.CompilerParams(dimension_semantics=("parallel",)),
    )(patches, w2, b2)

    # ---- tiny per-channel reduction + BN fold (f32; biased variance, eps=1e-5) ----
    stats = jnp.sum(part_stats, axis=0)                       # (Cout, 2)
    mean = stats[:, 0] / M
    var = jnp.maximum(stats[:, 1] / M - mean * mean, 0.0)     # biased var (training mode)
    inv = lax.rsqrt(var + EPS)
    g = gamma.astype(jnp.float32)
    scale = (g * inv).reshape(Cout, 1)
    shift = (beta.astype(jnp.float32) - mean * g * inv).reshape(Cout, 1)

    # ---- pass 2: normalize + LeakyReLU (tiled over M, megacore-parallel) ----
    y = pl.pallas_call(
        bn_act_kernel,
        out_shape=jax.ShapeDtypeStruct((Cout, M), jnp.float32),
        grid_spec=pltpu.PrefetchScalarGridSpec(
            num_scalar_prefetch=0,
            grid=(n_tiles,),
            in_specs=[pl.BlockSpec((Cout, tm), lambda i: (0, i)),
                      pl.BlockSpec((Cout, 1), lambda i: (0, 0)),
                      pl.BlockSpec((Cout, 1), lambda i: (0, 0))],
            out_specs=pl.BlockSpec((Cout, tm), lambda i: (0, i))),
        compiler_params=pltpu.CompilerParams(dimension_semantics=("parallel",)),
    )(conv, scale, shift)

    # (Cout, M) -> (N, Cout, H, W)   (m is (n, h, w) row-major)
    return jnp.transpose(y.reshape(Cout, N, Ho, Wo), (1, 0, 2, 3))


# ---------------------------------------------------------------------------
# Pure-JAX reference (lax.conv) for correctness check.
# ---------------------------------------------------------------------------
def reference_forward(x_nchw, w_oihw, b, gamma, beta, padding=1):
    x = jnp.transpose(x_nchw, (0, 2, 3, 1))
    xpad = jnp.pad(x, ((0, 0), (padding, padding), (padding, padding), (0, 0)),
                   mode="reflect")
    w = jnp.transpose(w_oihw, (2, 3, 1, 0))
    conv = lax.conv_general_dilated(
        xpad, w, window_strides=(1, 1), padding="VALID",
        dimension_numbers=("NHWC", "HWIO", "NHWC"),
    ) + b.reshape(1, 1, 1, -1)
    mean = conv.mean(axis=(0, 1, 2), keepdims=True)
    var = ((conv - mean) ** 2).mean(axis=(0, 1, 2), keepdims=True)
    y = (conv - mean) * lax.rsqrt(var + EPS)
    y = y * gamma.reshape(1, 1, 1, -1) + beta.reshape(1, 1, 1, -1)
    y = jnp.where(y >= 0, y, NEG_SLOPE * y)
    return jnp.transpose(y, (0, 3, 1, 2))


if __name__ == "__main__":
    # ConvBlock(in_channels=4, out_channels=8, kernel_size=3, stride=1, padding=1)
    N, Cin, Cout, H, W, K = 2, 4, 8, 16, 16, 3

    key = jax.random.PRNGKey(0)
    kx_, kw_, kb_, kg_, kbe_ = jax.random.split(key, 5)

    x = jax.random.normal(kx_, (N, Cin, H, W), dtype=jnp.float32)
    fan_in = Cin * K * K
    bound = 1.0 / np.sqrt(fan_in)
    w_oihw = jax.random.uniform(kw_, (Cout, Cin, K, K), jnp.float32, -bound, bound)
    b = jax.random.uniform(kb_, (Cout,), jnp.float32, -bound, bound)
    gamma = jnp.ones((Cout,), jnp.float32) + 0.1 * jax.random.normal(kg_, (Cout,), jnp.float32)
    beta = 0.1 * jax.random.normal(kbe_, (Cout,), jnp.float32)

    # Jit the whole forward so pad / im2col / transposes fuse; cap tm at 256 here so the
    # small example exercises the multi-tile grid and the cross-tile stats combine.
    fwd = jax.jit(functools.partial(conv_block_forward, padding=1, max_tm=256))

    out = jax.block_until_ready(fwd(x, w_oihw, b, gamma, beta))
    ref = jax.block_until_ready(reference_forward(x, w_oihw, b, gamma, beta, padding=1))

    np.testing.assert_allclose(np.asarray(out), np.asarray(ref), rtol=1e-3, atol=1e-3)
    assert out.shape == (N, Cout, H, W)
    print("KERNEL_OK")
</pallas_src>

<mosaic_0001>
module attributes {stable_mosaic.version = 11 : i64} {
  func.func @conv_stats_kernel(%arg0: i32, %arg1: memref<36x256xf32, #tpu.memory_space<vmem>>, %arg2: memref<8x36xf32, #tpu.memory_space<vmem>>, %arg3: memref<8x1xf32, #tpu.memory_space<vmem>>, %arg4: memref<8x256xf32, #tpu.memory_space<vmem>>, %arg5: memref<1x8x2xf32, #tpu.memory_space<vmem>>) attributes {dimension_semantics = [#tpu.dimension_semantics<parallel>], iteration_bounds = array<i64: 2>, scalar_prefetch = 0 : i64, scratch_operands = 0 : i64, tpu.core_type = #tpu.core_type<tc>, window_params = [{transform_indices = @transform_0, window_bounds = array<i64: 36, 256>}, {pipeline_mode = #tpu.pipeline_mode<synchronous>, transform_indices = @transform_1, window_bounds = array<i64: 8, 36>}, {pipeline_mode = #tpu.pipeline_mode<synchronous>, transform_indices = @transform_2, window_bounds = array<i64: 8, 1>}, {transform_indices = @transform_3, window_bounds = array<i64: 8, 256>}, {transform_indices = @transform_4, window_bounds = array<i64: 1, 8, 2>}]} {
    %c0 = arith.constant 0 : index
    %c0_0 = arith.constant 0 : index
    %0 = vector.load %arg2[%c0, %c0_0] : memref<8x36xf32, #tpu.memory_space<vmem>>, vector<8x36xf32>
    %c0_1 = arith.constant 0 : index
    %c0_2 = arith.constant 0 : index
    %1 = vector.load %arg1[%c0_1, %c0_2] : memref<36x256xf32, #tpu.memory_space<vmem>>, vector<36x256xf32>
    %cst = arith.constant dense<0.000000e+00> : vector<8x256xf32>
    %2 = tpu.matmul %0, %1, %cst {dimension_numbers = #tpu.dot_dimension_numbers<[1], [0], [0], [1], [0, 0, 1, 1], [], []>} : vector<8x36xf32>, vector<36x256xf32>, vector<8x256xf32> -> vector<8x256xf32>
    %c0_3 = arith.constant 0 : index
    %c0_4 = arith.constant 0 : index
    %3 = vector.load %arg3[%c0_3, %c0_4] : memref<8x1xf32, #tpu.memory_space<vmem>>, vector<8x1xf32>
    %4 = vector.broadcast %3 : vector<8x1xf32> to vector<8x256xf32>
    %5 = arith.addf %2, %4 : vector<8x256xf32>
    %c0_5 = arith.constant 0 : index
    %c0_6 = arith.constant 0 : index
    %6 = vector.load %arg4[%c0_5, %c0_6] : memref<8x256xf32, #tpu.memory_space<vmem>>, vector<8x256xf32>
    tpu.vector_store %arg4[%c0_5, %c0_6], %5 {strides = array<i32>} : memref<8x256xf32, #tpu.memory_space<vmem>>, vector<8x256xf32>,
    %cst_7 = arith.constant dense<0.000000e+00> : vector<8xf32>
    %7 = vector.multi_reduction <add>, %5, %cst_7 [1] : vector<8x256xf32> to vector<8xf32>
    %8 = vector.shape_cast %7 : vector<8xf32> to vector<8x1xf32>
    %9 = arith.mulf %5, %5 : vector<8x256xf32>
    %cst_8 = arith.constant dense<0.000000e+00> : vector<8xf32>
    %10 = vector.multi_reduction <add>, %9, %cst_8 [1] : vector<8x256xf32> to vector<8xf32>
    %11 = vector.shape_cast %10 : vector<8xf32> to vector<8x1xf32>
    %12 = tpu.concatenate %8, %11 in 1 : vector<8x1xf32>, vector<8x1xf32> -> vector<8x2xf32>
    %13 = vector.shape_cast %12 : vector<8x2xf32> to vector<1x8x2xf32>
    %c0_9 = arith.constant 0 : index
    %c0_10 = arith.constant 0 : index
    %c0_11 = arith.constant 0 : index
    %14 = vector.load %arg5[%c0_9, %c0_10, %c0_11] : memref<1x8x2xf32, #tpu.memory_space<vmem>>, vector<1x8x2xf32>
    tpu.vector_store %arg5[%c0_9, %c0_10, %c0_11], %13 {strides = array<i32>} : memref<1x8x2xf32, #tpu.memory_space<vmem>>, vector<1x8x2xf32>,
    return
  }
  func.func @transform_0(%arg0: i32) -> (i32, i32) {
    %c0_i32 = arith.constant 0 : i32
    %c0_i32_0 = arith.constant 0 : i32
    return %c0_i32, %arg0 : i32, i32
  }
  func.func @transform_1(%arg0: i32) -> (i32, i32) {
    %c0_i32 = arith.constant 0 : i32
    %c0_i32_0 = arith.constant 0 : i32
    %c0_i32_1 = arith.constant 0 : i32
    return %c0_i32, %c0_i32_0 : i32, i32
  }
  func.func @transform_2(%arg0: i32) -> (i32, i32) {
    %c0_i32 = arith.constant 0 : i32
    %c0_i32_0 = arith.constant 0 : i32
    %c0_i32_1 = arith.constant 0 : i32
    return %c0_i32, %c0_i32_0 : i32, i32
  }
  func.func @transform_3(%arg0: i32) -> (i32, i32) {
    %c0_i32 = arith.constant 0 : i32
    %c0_i32_0 = arith.constant 0 : i32
    return %c0_i32, %arg0 : i32, i32
  }
  func.func @transform_4(%arg0: i32) -> (i32, i32, i32) {
    %c0_i32 = arith.constant 0 : i32
    %c0_i32_0 = arith.constant 0 : i32
    %c0_i32_1 = arith.constant 0 : i32
    return %arg0, %c0_i32, %c0_i32_0 : i32, i32, i32
  }
}

module attributes {stable_mosaic.version = 11 : i64} {
  func.func @bn_act_kernel(%arg0: i32, %arg1: memref<8x256xf32, #tpu.memory_space<vmem>>, %arg2: memref<8x1xf32, #tpu.memory_space<vmem>>, %arg3: memref<8x1xf32, #tpu.memory_space<vmem>>, %arg4: memref<8x256xf32, #tpu.memory_space<vmem>>) attributes {dimension_semantics = [#tpu.dimension_semantics<parallel>], iteration_bounds = array<i64: 2>, scalar_prefetch = 0 : i64, scratch_operands = 0 : i64, tpu.core_type = #tpu.core_type<tc>, window_params = [{transform_indices = @transform_0, window_bounds = array<i64: 8, 256>}, {pipeline_mode = #tpu.pipeline_mode<synchronous>, transform_indices = @transform_1, window_bounds = array<i64: 8, 1>}, {pipeline_mode = #tpu.pipeline_mode<synchronous>, transform_indices = @transform_2, window_bounds = array<i64: 8, 1>}, {transform_indices = @transform_3, window_bounds = array<i64: 8, 256>}]} {
    %c0 = arith.constant 0 : index
    %c0_0 = arith.constant 0 : index
    %0 = vector.load %arg1[%c0, %c0_0] : memref<8x256xf32, #tpu.memory_space<vmem>>, vector<8x256xf32>
    %c0_1 = arith.constant 0 : index
    %c0_2 = arith.constant 0 : index
    %1 = vector.load %arg2[%c0_1, %c0_2] : memref<8x1xf32, #tpu.memory_space<vmem>>, vector<8x1xf32>
    %2 = vector.broadcast %1 : vector<8x1xf32> to vector<8x256xf32>
    %3 = arith.mulf %0, %2 : vector<8x256xf32>
    %c0_3 = arith.constant 0 : index
    %c0_4 = arith.constant 0 : index
    %4 = vector.load %arg3[%c0_3, %c0_4] : memref<8x1xf32, #tpu.memory_space<vmem>>, vector<8x1xf32>
    %5 = vector.broadcast %4 : vector<8x1xf32> to vector<8x256xf32>
    %6 = arith.addf %3, %5 : vector<8x256xf32>
    %cst = arith.constant 0.000000e+00 : f32
    %7 = vector.broadcast %cst : f32 to vector<8x256xf32>
    %8 = arith.cmpf oge, %6, %7 : vector<8x256xf32>
    %cst_5 = arith.constant 0.00999999977 : f32
    %9 = vector.broadcast %cst_5 : f32 to vector<8x256xf32>
    %10 = arith.mulf %9, %6 : vector<8x256xf32>
    %11 = arith.select %8, %6, %10 : vector<8x256xi1>, vector<8x256xf32>
    %c0_6 = arith.constant 0 : index
    %c0_7 = arith.constant 0 : index
    %12 = vector.load %arg4[%c0_6, %c0_7] : memref<8x256xf32, #tpu.memory_space<vmem>>, vector<8x256xf32>
    tpu.vector_store %arg4[%c0_6, %c0_7], %11 {strides = array<i32>} : memref<8x256xf32, #tpu.memory_space<vmem>>, vector<8x256xf32>,
    return
  }
  func.func @transform_0(%arg0: i32) -> (i32, i32) {
    %c0_i32 = arith.constant 0 : i32
    %c0_i32_0 = arith.constant 0 : i32
    return %c0_i32, %arg0 : i32, i32
  }
  func.func @transform_1(%arg0: i32) -> (i32, i32) {
    %c0_i32 = arith.constant 0 : i32
    %c0_i32_0 = arith.constant 0 : i32
    %c0_i32_1 = arith.constant 0 : i32
    return %c0_i32, %c0_i32_0 : i32, i32
  }
  func.func @transform_2(%arg0: i32) -> (i32, i32) {
    %c0_i32 = arith.constant 0 : i32
    %c0_i32_0 = arith.constant 0 : i32
    %c0_i32_1 = arith.constant 0 : i32
    return %c0_i32, %c0_i32_0 : i32, i32
  }
  func.func @transform_3(%arg0: i32) -> (i32, i32) {
    %c0_i32 = arith.constant 0 : i32
    %c0_i32_0 = arith.constant 0 : i32
    return %c0_i32, %arg0 : i32, i32
  }
}

</mosaic_0001>

<bundles_post_ra>
// kernel: conv_block_forward.3
= control target key start
LH: loop header
LB: loop body
LE: loop exit
PB: predicated region body
PF: predicated region fallthrough
CT: control target
= control target key end

     0   :  { %s306_s12 = smov 0   ;;  %s329_s0 = inlined_call_operand.vmem [shape: f32[8,512], index: 0, kind: input, shape index: {}]   ;;  %s330_s1 = inlined_call_operand.vmem [shape: f32[8,1], index: 1, kind: input, shape index: {}]   ;;  %s331_s2 = inlined_call_operand.vmem [shape: f32[8,1], index: 2, kind: input, shape index: {}]   ;;  %s332_s3 = inlined_call_operand.vmem [shape: f32[8,512], index: 3, kind: output, shape index: {}]  }
   0x1 LB: > { %s256_s13 = sadd.s32 4294967295, %s283_s12   ;;  %p260_p0 = scmp.ge.s32.totalorder %s283_s12, 1  ;;  %s283_s12 = sphi %s306_s12, %s13_s12  }
   0x2   : > { %p138_p1 = scmp.lt.s32.totalorder %s283_s12, 3 }
   0x4   : > { %p139_p2 = pnand %p260_p0, %p138_p1 }
   0x5   : > { %v176_v0 = vld [vmem:[%s330_s1] sm:$0xff] (!%p139_p2)  ;;  %v285_v1 = vmov (!%p139_p2), 0   ;;  %s261_s18 = sshll.u32 (!%p139_p2), %s256_s13, 1 }
   0x6   : > { %142 = sbr.rel (%p139_p2) target bundleno = 145 (0x91), region = 32  ;;  %276 = vset.pattern.permute.xlu0 (!%p139_p2), %v285_v1  ;;  %v184_v2 = vld [vmem:[%s331_s2] sm:$0xff] (!%p139_p2)  ;;  %p163_p3 = scmp.lt.s32.totalorder (!%p139_p2), %s261_s18, 3 }
   0x7   : > { %179 = vperm.xlu0 (!%p139_p2), %276, %v176_v0  }
   0xb   : > { %187 = vperm.xlu0 (!%p139_p2), %276, %v184_v2  }
   0xd   : > { %s334_s18 = smov (!%p163_p3, %s261_s18), 3 }
   0xe   : > { %s262_s19 = sshll.u32 %s334_s18, 3 }
   0xf   : > { %s166_s22 = scalar_lea.vmem %s329_s0, %s262_s19  ;;  %s172_s25 = scalar_lea.vmem %s332_s3, %s262_s19 }
  0x10   : > { %v174_v4 = vld [vmem:[%s166_s22] sm:$0xff]  ;;  %v175_v5 = vld [vmem:[%s166_s22 + $0x8] sm:$0xff] }
  0x86   : > { %v180_v3 = vpop.permute.xlu0 %179 }
  0x87   : > { %v182_v6 = vmul.f32 %v180_v3, %v174_v4  ;;  %v183_v7 = vmul.f32 %v180_v3, %v175_v5 }
  0x8a   : > { %v188_v8 = vpop.permute.xlu0 %187 }
  0x8b   : > { %v190_v9 = vadd.f32 %v188_v8, %v182_v6  ;;  %v191_v10 = vadd.f32 %v188_v8, %v183_v7 }
  0x8d   : > { %vm192_vm0 = vcmp.ge.f32.partialorder %v190_v9, 0.0  ;;  %vm193_vm1 = vcmp.ge.f32.partialorder %v191_v10, 0.0  ;;  %v194_v11 = vmul.f32 0.01, %v190_v9  ;;  %v195_v12 = vmul.f32 0.01, %v191_v10 }
  0x8f   : > { %v196_v13 = vsel %vm192_vm0, %v190_v9, %v194_v11  ;;  %v197_v14 = vsel %vm193_vm1, %v191_v10, %v195_v12 }
  0x90   : > { %198 = vst [vmem:[%s172_s25] sm:$0xff] %v196_v13  ;;  %199 = vst [vmem:[%s172_s25 + $0x8] sm:$0xff] %v197_v14 }
  0x91 PF: > { %s13_s12 = sadd.s32 1, %s283_s12  }
  0x92   : > { %p10_p4 = scmp.ge.s32.totalorder %s13_s12, 4  }
  0x94   :  { %12 = sbr.rel (!%p10_p4) target bundleno = 1 (0x1), region = 62 }

// kernel: conv_block_forward.2
= control target key start
LH: loop header
LB: loop body
LE: loop exit
PB: predicated region body
PF: predicated region fallthrough
CT: control target
= control target key end

     0   :  { %s559_s15 = smov 0   ;;  %s561_s16 = smov 0   ;;  %s623_s0 = inlined_call_operand.vmem [shape: f32[36,512], index: 0, kind: input, shape index: {}]   ;;  %s624_s1 = inlined_call_operand.vmem [shape: f32[8,36], index: 1, kind: input, shape index: {}]   ;;  %s625_s2 = inlined_call_operand.vmem [shape: f32[8,1], index: 2, kind: input, shape index: {}]   ;;  %s626_s3 = inlined_call_operand.vmem [shape: f32[8,512], index: 3, kind: output, shape index: {0}]   ;;  %s627_s4 = inlined_call_operand.vmem [shape: f32[2,8,2], index: 4, kind: output, shape index: {1}]  }
   0x1   :  { %s563_s17 = smov 0  }
   0x2 LB: > { %s575_s18 = sadd.s32 4294967295, %s530_s17   ;;  %s578_s19 = sadd.s32 1, %s530_s17   ;;  %s530_s17 = sphi %s563_s17, %s630_s17   ;;  %s526_s16 = sphi %s561_s16, %s629_s16   ;;  %s522_s15 = sphi %s559_s15, %s628_s15  }
   0x3   : > { %s19_s20 = ssub.s32 %s530_s17, %s578_s19  ;;  %s22_s21 = sadd.s32 1, %s526_s16 }
   0x4   : > { %p20_p0 = scmp.eq.s32.totalorder %s19_s20, 0  ;;  %p29_p1 = scmp.ne.s32.totalorder %s526_s16, %s522_s15 }
   0x5   : > { %p30_p2 = scmp.eq.s32.totalorder %s530_s17, 0  ;;  %p458_p4 = scmp.ge.s32.totalorder %s530_s17, 2 }
   0x6   : > { %s587_s22 = scalar_select %p20_p0, %s526_s16, %s22_s21  }
   0x7   : > { %p31_p3 = por %p30_p2, %p29_p1  ;;  %155 = sbr.rel (%p458_p4) target bundleno = 23 (0x17), region = 24 }
   0xe   : > { %158 = sbr.rel (!%p31_p3) target bundleno = 23 (0x17), region = 28  ;;  %s160_s23 = sand.u32 (%p31_p3), 1, %s526_s16  }
   0xf   : > { %s470_s24 = sshll.u32 (%p31_p3), %s530_s17, 4  ;;  %s479_s25 = smul.u32 (%p31_p3), 80, %s160_s23 }
  0x10   : > { %s165_s28 = scalar_lea.vmem (%p31_p3), %s623_s0, %s470_s24 }
  0x11   : > { %v178_v0 = vld [vmem:[%s165_s28] sm:$0xff] (%p31_p3)  ;;  %v180_v1 = vld [vmem:[%s165_s28 + $0x8] sm:$0xff] (%p31_p3)  ;;  %s162_s29 = scalar_lea.vmem (%p31_p3), [#allocation2], %s479_s25 }
  0x12   : > { %v182_v2 = vld [vmem:[%s165_s28 + $0x20] sm:$0xff] (%p31_p3)  ;;  %v184_v3 = vld [vmem:[%s165_s28 + $0x28] sm:$0xff] (%p31_p3)  ;;  %179 = vst [vmem:[%s162_s29] sm:$0xff] (%p31_p3), %v178_v0  ;;  %181 = vst [vmem:[%s162_s29 + $0x8] sm:$0xff] (%p31_p3), %v180_v1 }
  0x13   : > { %v186_v4 = vld [vmem:[%s165_s28 + $0x40] sm:$0xff] (%p31_p3)  ;;  %v188_v5 = vld [vmem:[%s165_s28 + $0x48] sm:$0xff] (%p31_p3)  ;;  %183 = vst [vmem:[%s162_s29 + $0x10] sm:$0xff] (%p31_p3), %v182_v2  ;;  %185 = vst [vmem:[%s162_s29 + $0x18] sm:$0xff] (%p31_p3), %v184_v3 }
  0x14   : > { %187 = vst [vmem:[%s162_s29 + $0x20] sm:$0xff] (%p31_p3), %v186_v4  ;;  %189 = vst [vmem:[%s162_s29 + $0x28] sm:$0xff] (%p31_p3), %v188_v5  ;;  %v190_v6 = vld [vmem:[%s165_s28 + $0x60] sm:$0xff] (%p31_p3)  ;;  %v192_v7 = vld [vmem:[%s165_s28 + $0x68] sm:$0xff] (%p31_p3) }
  0x15   : > { %v194_v8 = vld [vmem:[%s165_s28 + $0x80] sm:$0xff]  ;;  %191 = vst [vmem:[%s162_s29 + $0x30] sm:$0xff] %v190_v6  ;;  %193 = vst [vmem:[%s162_s29 + $0x38] sm:$0xff] %v192_v7  ;;  %v196_v9 = vld [vmem:[%s165_s28 + $0x88] sm:$0xff] }
  0x16   : > { %195 = vst [vmem:[%s162_s29 + $0x40] sm:$0xff] %v194_v8  ;;  %197 = vst [vmem:[%s162_s29 + $0x48] sm:$0xff] %v196_v9 }
  0x17 PF: > { %p461_p5 = scmp.ge.s32.totalorder %s530_s17, 1  ;;  %p202_p6 = scmp.lt.s32.totalorder %s530_s17, 3 }
  0x19   : > { %p203_p7 = pnand %p461_p5, %p202_p6 }
  0x1a   : > { %s209_s30 = sand.u32 (!%p203_p7), 1, %s522_s15   ;;  %v532_v10 = vmov (!%p203_p7), 0.0   ;;  %v533_v11 = vmov (!%p203_p7), 0   ;;  %v260_v12 = vld [vmem:[%s625_s2] sm:$0xff] (!%p203_p7)  ;;  %vm270_vm0 = vcmask (!%p203_p7), 1043456   ;;  %vm266_vm1 = vcmask (!%p203_p7), 293888  }
  0x1b   : > { %206 = sbr.rel (%p203_p7) target bundleno = 407 (0x197), region = 51  ;;  %341 = vmatprep.mubr.f32.mxu0 (!%p203_p7), %v532_v10  ;;  %507 = vset.pattern.permute.xlu0 (!%p203_p7), %v533_v11  ;;  %v249_v27 = vld [vmem:[%s624_s1] sm:$0xff] (!%p203_p7)  ;;  %s462_s11 = sshll.u32 (!%p203_p7), %s575_s18, 1  ;;  %vm358_vm2 = vcmask (!%p203_p7), 7168   ;;  %vm360_vm3 = vcmask (!%p203_p7), 15360  }
  0x1c   : > { %s480_s5 = smul.u32 (!%p203_p7), 80, %s209_s30  ;;  %263 = vperm.xlu0 (!%p203_p7), %507, %v260_v12   ;;  %p240_p8 = scmp.lt.s32.totalorder (!%p203_p7), %s462_s11, 3 }
  0x1d   : > { %p245_p9 = scmp.lt.s32.totalorder (!%p203_p7), %s575_s18, 1 }
  0x1e   : > { %s211_s8 = scalar_lea.vmem (!%p203_p7), [#allocation2], %s480_s5 }
  0x1f   : > { %v251_v13 = vld [vmem:[%s211_s8 + $0x8] sm:$0xff] (!%p203_p7)  ;;  %v253_v14 = vld [vmem:[%s211_s8 + $0x18] sm:$0xff] (!%p203_p7)  ;;  %v250_v15 = vld [vmem:[%s211_s8] sm:$0xff] (!%p203_p7) }
  0x20   : > { %v471_v16 = vpack.c.bf16 (!%p203_p7), %v253_v14, %v251_v13  ;;  %v252_v17 = vld [vmem:[%s211_s8 + $0x10] sm:$0xff] (!%p203_p7)  ;;  %v255_v18 = vld [vmem:[%s211_s8 + $0x28] sm:$0xff] (!%p203_p7)  ;;  %v257_v19 = vld [vmem:[%s211_s8 + $0x38] sm:$0xff] (!%p203_p7) }
  0x21   : > { %v473_v20 = vpack.c.bf16 (!%p203_p7), %v252_v17, %v250_v15  ;;  %v475_v21 = vpack.c.bf16 (!%p203_p7), %v257_v19, %v255_v18  ;;  %v254_v22 = vld [vmem:[%s211_s8 + $0x20] sm:$0xff] (!%p203_p7)  ;;  %v256_v23 = vld [vmem:[%s211_s8 + $0x30] sm:$0xff] (!%p203_p7)  ;;  %v259_v25 = vld [vmem:[%s211_s8 + $0x48] sm:$0xf] (!%p203_p7) }
  0x22   : > { %472 = vmatprep.subr.bf16.mxu0 %v471_v16  ;;  %v477_v24 = vpack.c.bf16 %v256_v23, %v254_v22  ;;  %v258_v26 = vld [vmem:[%s211_s8 + $0x40] sm:$0xf]  ;;  %s632_s11 = smov (!%p240_p8, %s462_s11), 3  ;;  %s634_s18 = smov (!%p245_p9, %s575_s18), 1 }
  0x23   : > { %474 = vmatpush1.bf16.msra.mxu0 %v473_v20  ;;  %s463_s12 = sshll.u32 %s632_s11, 3  ;;  %s464_s17 = sshll.u32 %s634_s18, 3 }
  0x24   : > { %476 = vmatprep.subr.bf16.mxu0 %v475_v21  ;;  %s243_s15 = scalar_lea.vmem %s626_s3, %s463_s12  ;;  %s248_s23 = scalar_lea.vmem %s627_s4, %s464_s17 }
  0x27   : > { %478 = vmatpush1.bf16.msra.mxu0 %v477_v24 }
  0x28   : > { %465 = vmatprep.subr.msk.mxu0 %vm270_vm0, %v259_v25 }
  0x2b   : > { %466 = vmatpush1.msk.msra.mxu0 %vm270_vm0, %v258_v26 }
  0x2c   : > { %467 = vmatmul.mubr.msk.f32.vlgmr.msra.gmra.mrb[0].mxu0 %vm266_vm1, %v249_v27 }
  0x9b   : > { %v264_v28 = vpop.permute.xlu0 %263 }
  0xff   : > { %v343_v29 = vpop.f32.mrb[0].mxu0 }
 0x100   : > { %v344_v30 = vadd.f32 %v343_v29, %v264_v28  ;;  %v345_v31 = vpop.f32.mrb[1].mxu0 }
 0x101   : > { %v346_v32 = vadd.f32 %v345_v31, %v264_v28 }
 0x102   : > { %348 = vst [vmem:[%s243_s15] sm:$0xff] %v344_v30  ;;  %v353_v33 = vmul.f32 %v344_v30, %v344_v30 }
 0x103   : > { %349 = vst [vmem:[%s243_s15 + $0x8] sm:$0xff] %v346_v32  ;;  %v350_v34 = vadd.f32 %v346_v32, %v344_v30  ;;  %v354_v35 = vmul.f32 %v346_v32, %v346_v32 }
 0x105   : > { %351 = vadd.xlane.f32.xlu0 %v350_v34  ;;  %v355_v36 = vadd.f32 %v354_v35, %v353_v33 }
 0x107   : > { %356 = vadd.xlane.f32.xlu1 %v355_v36 }
 0x192   : > { %v352_v37 = vpop.xlane.xlu0 %351 }
 0x194   : > { %v357_v38 = vpop.xlane.xlu1 %356 }
 0x195   : > { %v359_v39 = vsel %vm358_vm2, %v352_v37, %v357_v38 }
 0x196   : > { %361 = vst.msk [vmem:[%s248_s23] sm:$0xff] %vm360_vm3, %v359_v39 }
 0x197 PF: > { %p12_p10 = scmp.ge.s32.totalorder %s578_s19, 4   ;;  %s628_s15 = smov %s526_s16 }
 0x198   : > { %s629_s16 = smov %s587_s22  ;;  %s630_s17 = smov %s578_s19 }
 0x199   :  { %14 = sbr.rel (!%p12_p10) target bundleno = 2 (0x2), region = 102 }

</bundles_post_ra>
